<compile_context>
chip_gen: v7x
topology: tpu7x:2x2x1
jax: 0.10.0
libtpu: 0.0.40
codegen_flags: <defaults>
</compile_context>

<pallas_src>
import jax
import jax.numpy as jnp
from jax.experimental import pallas as pl
from jax.experimental.pallas import tpu as pltpu

IN_FEATURES = 2048


def embedding_kernel(x_ref, w_ref, b_ref, o_ref, acc_ref):
    # x_ref: (B, TK) f32   w_ref: (TK, TE) bf16   b_ref: (1, TE) f32
    # o_ref: (B, TE) f32   acc_ref: (B, TE) f32 scratch (persists across K steps)
    k = pl.program_id(1)

    @pl.when(k == 0)
    def _():
        acc_ref[...] = jnp.zeros_like(acc_ref)

    # ReLU in f32 (v5e VPU has no bf16), then cast to bf16 for the MXU; f32 accumulate.
    x = jnp.maximum(x_ref[...], 0.0).astype(jnp.bfloat16)
    acc_ref[...] += jnp.dot(x, w_ref[...], preferred_element_type=jnp.float32)

    @pl.when(k == pl.num_programs(1) - 1)
    def _():
        o_ref[...] = (acc_ref[...] + b_ref[...]).astype(o_ref.dtype)


def _pick_tiles(E_padded, K):
    """Pick (TE, TK) for grid = (E_padded // TE, K // TK).

    TE: largest multiple-of-128 divisor of E_padded, capped at 1024, subject to
    giving >= 2 E-steps (pipelining + dual-TC on v7x).  If E_padded == 128 the
    E axis cannot give 2 steps, so K is tiled instead to restore pipelining.
    """
    m = E_padded // 128  # E_padded is always a multiple of 128 (padded in prepare)
    best_d = 0
    for d in range(1, m + 1):
        if m % d == 0 and d * 128 <= 1024 and m // d >= 2:
            best_d = max(best_d, d)
    if best_d > 0:
        te = best_d * 128
        tk = K  # >= 2 E-steps already -> full-K weight tiles (best overhead amortization)
    else:
        te = E_padded  # single E step (E == 128)
        tk = 512 if K % 512 == 0 else K  # tile K so the pipeline has >= 2 steps
    return te, tk


def prepare_embedding_params(weight_t, bias):
    """One-time parameter prep (call once at init, NOT per forward call).

    - Pads the output/E dimension up to a multiple of 128 (lane-dense stores).
    - Casts the Linear weight [2048, E] to bf16, halving the dominant HBM read.
    Returns (w_bf16 [K, Ep], bias2d [1, Ep] f32).
    """
    K, E = weight_t.shape
    Ep = ((E + 127) // 128) * 128
    if Ep != E:
        weight_t = jnp.pad(weight_t, ((0, 0), (0, Ep - E)))
        bias = jnp.pad(bias, ((0, Ep - E),))
    w_bf16 = weight_t.astype(jnp.bfloat16)
    bias2d = bias.reshape(1, Ep).astype(jnp.float32)
    return w_bf16, bias2d


def embedding_layer(x_nchw, w_bf16, bias2d, embed_size):
    # x_nchw: [B, 2048, 1, 1] -> squeeze trailing 1x1 spatial dims -> [B, 2048]
    B = x_nchw.shape[0]
    x = x_nchw.reshape(B, x_nchw.shape[1])
    K = x.shape[1]
    Ep = w_bf16.shape[1]

    TE, TK = _pick_tiles(Ep, K)
    grid = (Ep // TE, K // TK)

    cost = pl.CostEstimate(
        flops=2 * B * K * Ep,
        transcendentals=0,
        bytes_accessed=(B * K * 4) + (K * Ep * 2) + (Ep * 4) + (B * Ep * 4),
    )

    out = pl.pallas_call(
        embedding_kernel,
        out_shape=jax.ShapeDtypeStruct((B, Ep), jnp.float32),
        grid_spec=pltpu.PrefetchScalarGridSpec(
            num_scalar_prefetch=0,
            grid=grid,
            in_specs=[
                pl.BlockSpec((B, TK), lambda j, k: (0, k)),   # activations
                pl.BlockSpec((TK, TE), lambda j, k: (k, j)),  # bf16 weight (streamed)
                pl.BlockSpec((1, TE), lambda j, k: (0, j)),   # bias
            ],
            out_specs=pl.BlockSpec((B, TE), lambda j, k: (0, j)),
            scratch_shapes=[pltpu.VMEM((B, TE), jnp.float32)],
        ),
        compiler_params=pltpu.CompilerParams(
            # E-tiles independent -> megacore-shardable; K is the reduction axis (last).
            dimension_semantics=("parallel", "arbitrary"),
            vmem_limit_bytes=32 * 1024 * 1024,
        ),
        cost_estimate=cost,
    )(x, w_bf16, bias2d)

    if Ep != embed_size:
        out = out[:, :embed_size]
    return out


if __name__ == "__main__":
    embed_size = 256   # -> TE=128, grid=(2, 1): pipelined / dual-TC path is exercised
    batch = 2

    key = jax.random.PRNGKey(0)
    kx, kw, kb = jax.random.split(key, 3)

    # Synthetic nn.Linear-style init; PyTorch weight is [embed_size, 2048],
    # stored transposed here as [2048, embed_size].
    bound = 1.0 / jnp.sqrt(IN_FEATURES)
    weight_t = jax.random.uniform(
        kw, (IN_FEATURES, embed_size), jnp.float32, -bound, bound
    )
    bias = jax.random.uniform(kb, (embed_size,), jnp.float32, -bound, bound)

    # Input consistent with the forward: [B, 2048, 1, 1]
    x = jax.random.normal(kx, (batch, IN_FEATURES, 1, 1), jnp.float32)

    # One-time param prep (bf16 cast + lane padding hoisted out of the call path).
    w_bf16, bias2d = prepare_embedding_params(weight_t, bias)

    fwd = jax.jit(embedding_layer, static_argnames=("embed_size",))
    out = fwd(x, w_bf16, bias2d, embed_size=embed_size)
    out = jax.block_until_ready(out)
    assert out.shape == (batch, embed_size), out.shape

    # Reference 1: identical bf16-input / f32-accumulate math (tight tolerance).
    x2d = x.reshape(batch, IN_FEATURES)
    relu_bf16 = jnp.maximum(x2d, 0.0).astype(jnp.bfloat16)
    ref_bf16 = (
        jnp.dot(relu_bf16, weight_t.astype(jnp.bfloat16),
                preferred_element_type=jnp.float32)
        + bias
    )
    assert jnp.allclose(out, ref_bf16, atol=1e-3, rtol=1e-3)

    # Reference 2: full-f32 math (loose tolerance covers bf16 weight quantization).
    ref_f32 = jnp.maximum(x2d, 0.0) @ weight_t + bias
    assert jnp.allclose(out, ref_f32, atol=3e-2, rtol=3e-2)

    print("KERNEL_OK")
</pallas_src>

<mosaic_0001>
module attributes {stable_mosaic.version = 11 : i64} {
  func.func @embedding_kernel(%arg0: i32, %arg1: i32, %arg2: memref<2x2048xf32, #tpu.memory_space<vmem>>, %arg3: memref<2048x128xbf16, #tpu.memory_space<vmem>>, %arg4: memref<1x128xf32, #tpu.memory_space<vmem>>, %arg5: memref<2x128xf32, #tpu.memory_space<vmem>>, %arg6: memref<2x128xf32, #tpu.memory_space<vmem>>) attributes {dimension_semantics = [#tpu.dimension_semantics<parallel>, #tpu.dimension_semantics<arbitrary>], iteration_bounds = array<i64: 2, 1>, scalar_prefetch = 0 : i64, scratch_operands = 1 : i64, tpu.core_type = #tpu.core_type<tc>, window_params = [{transform_indices = @transform_0, window_bounds = array<i64: 2, 2048>}, {transform_indices = @transform_1, window_bounds = array<i64: 2048, 128>}, {transform_indices = @transform_2, window_bounds = array<i64: 1, 128>}, {transform_indices = @transform_3, window_bounds = array<i64: 2, 128>}]} {
    %c0_i32 = arith.constant 0 : i32
    %0 = arith.cmpi eq, %arg1, %c0_i32 : i32
    %1 = arith.extui %0 : i1 to i32
    %c0_i32_0 = arith.constant 0 : i32
    %2 = arith.cmpi ne, %1, %c0_i32_0 : i32
    scf.if %2 {
      %cst_11 = arith.constant 0.000000e+00 : f32
      %15 = vector.broadcast %cst_11 : f32 to vector<2x128xf32>
      %c0_12 = arith.constant 0 : index
      %c0_13 = arith.constant 0 : index
      %16 = vector.load %arg6[%c0_12, %c0_13] : memref<2x128xf32, #tpu.memory_space<vmem>>, vector<2x128xf32>
      tpu.vector_store %arg6[%c0_12, %c0_13], %15 {strides = array<i32>} : memref<2x128xf32, #tpu.memory_space<vmem>>, vector<2x128xf32>,
    } else {
    }
    %c0 = arith.constant 0 : index
    %c0_1 = arith.constant 0 : index
    %3 = vector.load %arg2[%c0, %c0_1] : memref<2x2048xf32, #tpu.memory_space<vmem>>, vector<2x2048xf32>
    %cst = arith.constant 0.000000e+00 : f32
    %4 = vector.broadcast %cst : f32 to vector<2x2048xf32>
    %5 = arith.maximumf %3, %4 : vector<2x2048xf32>
    %6 = arith.truncf %5 : vector<2x2048xf32> to vector<2x2048xbf16>
    %c0_2 = arith.constant 0 : index
    %c0_3 = arith.constant 0 : index
    %7 = vector.load %arg6[%c0_2, %c0_3] : memref<2x128xf32, #tpu.memory_space<vmem>>, vector<2x128xf32>
    %c0_4 = arith.constant 0 : index
    %c0_5 = arith.constant 0 : index
    %8 = vector.load %arg3[%c0_4, %c0_5] : memref<2048x128xbf16, #tpu.memory_space<vmem>>, vector<2048x128xbf16>
    %cst_6 = arith.constant dense<0.000000e+00> : vector<2x128xf32>
    %9 = tpu.matmul %6, %8, %cst_6 {dimension_numbers = #tpu.dot_dimension_numbers<[1], [0], [0], [1], [0, 0, 1, 1], [], []>} : vector<2x2048xbf16>, vector<2048x128xbf16>, vector<2x128xf32> -> vector<2x128xf32>
    %10 = arith.addf %7, %9 : vector<2x128xf32>
    %c0_7 = arith.constant 0 : index
    %c0_8 = arith.constant 0 : index
    %11 = vector.load %arg6[%c0_7, %c0_8] : memref<2x128xf32, #tpu.memory_space<vmem>>, vector<2x128xf32>
    tpu.vector_store %arg6[%c0_7, %c0_8], %10 {strides = array<i32>} : memref<2x128xf32, #tpu.memory_space<vmem>>, vector<2x128xf32>,
    %c0_i32_9 = arith.constant 0 : i32
    %12 = arith.cmpi eq, %arg1, %c0_i32_9 : i32
    %13 = arith.extui %12 : i1 to i32
    %c0_i32_10 = arith.constant 0 : i32
    %14 = arith.cmpi ne, %13, %c0_i32_10 : i32
    scf.if %14 {
      %c0_11 = arith.constant 0 : index
      %c0_12 = arith.constant 0 : index
      %15 = vector.load %arg6[%c0_11, %c0_12] : memref<2x128xf32, #tpu.memory_space<vmem>>, vector<2x128xf32>
      %c0_13 = arith.constant 0 : index
      %c0_14 = arith.constant 0 : index
      %16 = vector.load %arg4[%c0_13, %c0_14] : memref<1x128xf32, #tpu.memory_space<vmem>>, vector<1x128xf32>
      %17 = vector.broadcast %16 : vector<1x128xf32> to vector<2x128xf32>
      %18 = arith.addf %15, %17 : vector<2x128xf32>
      %c0_15 = arith.constant 0 : index
      %c0_16 = arith.constant 0 : index
      %19 = vector.load %arg5[%c0_15, %c0_16] : memref<2x128xf32, #tpu.memory_space<vmem>>, vector<2x128xf32>
      tpu.vector_store %arg5[%c0_15, %c0_16], %18 {strides = array<i32>} : memref<2x128xf32, #tpu.memory_space<vmem>>, vector<2x128xf32>,
    } else {
    }
    return
  }
  func.func @transform_0(%arg0: i32, %arg1: i32) -> (i32, i32) {
    %c0_i32 = arith.constant 0 : i32
    %c0_i32_0 = arith.constant 0 : i32
    return %c0_i32, %arg1 : i32, i32
  }
  func.func @transform_1(%arg0: i32, %arg1: i32) -> (i32, i32) {
    %c0_i32 = arith.constant 0 : i32
    return %arg1, %arg0 : i32, i32
  }
  func.func @transform_2(%arg0: i32, %arg1: i32) -> (i32, i32) {
    %c0_i32 = arith.constant 0 : i32
    %c0_i32_0 = arith.constant 0 : i32
    return %c0_i32, %arg0 : i32, i32
  }
  func.func @transform_3(%arg0: i32, %arg1: i32) -> (i32, i32) {
    %c0_i32 = arith.constant 0 : i32
    %c0_i32_0 = arith.constant 0 : i32
    return %c0_i32, %arg0 : i32, i32
  }
}

</mosaic_0001>

<bundles_post_ra>
// kernel: embedding_layer.1
= control target key start
LH: loop header
LB: loop body
LE: loop exit
PB: predicated region body
PF: predicated region fallthrough
CT: control target
= control target key end

     0   :  { %8 = vsyncpa [#allocation4], 0  ;;  %s2822_s0 = inlined_call_operand.vmem [shape: f32[2,2048], index: 0, kind: input, shape index: {}]   ;;  %s2823_s1 = inlined_call_operand.hbm [shape: bf16[2048,256], index: 1, kind: input, shape index: {}]   ;;  %s2824_s2 = inlined_call_operand.vmem [shape: f32[1,256], index: 2, kind: input, shape index: {}]   ;;  %s2825_s3 = inlined_call_operand.hbm [shape: f32[2,256], index: 3, kind: output, shape index: {}]  }
   0x1   :  { %10 = vsyncpa [#allocation4 + $0x1], 0 }
   0x2   :  { %11 = vsyncpa [#allocation5], 0 }
   0x3   :  { %13 = vsyncpa [#allocation5 + $0x1], 0  ;;  %s2493_s12 = smov 0   ;;  %s2495_s13 = smov 0  }
   0x4   :  { %s2497_s14 = smov 0   ;;  %s2499_s15 = smov 0  }
   0x5   :  { %s2501_s16 = smov 0   ;;  %s2503_s17 = smov 0  }
   0x6 LB: > { %s1838_s18 = sadd.s32 4294967295, %s2464_s17   ;;  %s1839_s19 = sadd.s32 4294967294, %s2464_s17   ;;  %s2464_s17 = sphi %s2503_s17, %s19_s17   ;;  %s2460_s16 = sphi %s2501_s16, %s2839_s16   ;;  %s2456_s15 = sphi %s2499_s15, %s2838_s15   ;;  %s2452_s14 = sphi %s2497_s14, %s2837_s14   ;;  %s2448_s13 = sphi %s2495_s13, %s2836_s13   ;;  %s2444_s12 = sphi %s2493_s12, %s2835_s12  }
   0x7   : > { %s31_s20 = sadd.s32 1, %s2460_s16  ;;  %s66_s21 = sadd.s32 1, %s2452_s14 }
   0x8   : > { %p33_p0 = scmp.ge.s32.totalorder %s31_s20, 2  ;;  %p73_p1 = scmp.ne.s32.totalorder %s2452_s14, %s2448_s13 }
   0x9   : > { %p74_p2 = scmp.eq.s32.totalorder %s2464_s17, 0  ;;  %p79_p3 = scmp.ne.s32.totalorder %s2448_s13, %s2444_s12 }
   0xa   : > { %s2841_s20 = smov (%p33_p0, %s31_s20), 0  ;;  %p80_p5 = scmp.eq.s32.totalorder %s1838_s18, 0 }
   0xb   : > { %p2534_p4 = por %p74_p2, %p73_p1  ;;  %s62_s23 = ssub.s32 %s2460_s16, %s2841_s20 }
   0xc   : > { %p129_p6 = scmp.eq.s32.totalorder %s1838_s18, 1  ;;  %p64_p7 = scmp.eq.s32.totalorder %s62_s23, 0 }
   0xd   : > { %p2540_p8 = por %p80_p5, %p79_p3  ;;  %p135_p10 = scmp.eq.s32.totalorder %s1839_s19, 1 }
   0xe   : > { %p2544_p9 = por %p129_p6, %p73_p1  ;;  %p2169_p13 = scmp.lt.s32.totalorder %s2464_s17, 2 }
   0xf   : > { %s2549_s26 = scalar_select %p64_p7, %s2452_s14, %s66_s21  }
  0x10   : > { %s2829_s25 = scalar_select %p2544_p9, 1, 0 }
  0x11   : > { %p2551_p11 = por %p135_p10, %p79_p3  ;;  %s164_s28 = sand.u32 1, %s2452_s14  }
  0x12   : > { %s1843_s29 = sshll.u32 %s164_s28, 10  ;;  %s1844_s30 = sshll.u32 %s2460_s16, 6 }
  0x13   : > { %s2830_s27 = scalar_select %p2551_p11, 1, 0 }
  0x14   : > { %s2562_s6 = scalar_lea.hbm %s2823_s1, %s1844_s30  ;;  %s168_s7 = scalar_lea.vmem [#allocation3], %s1843_s29 }
  0x15   : > { %s177_s8 = sshll.u32 %s168_s7, 4  ;;  %p2568_p0 = pnand %p2169_p13, %p2534_p4  ;;  %s2564_s8 = int_to_ptr.vmem [resolvable:$true] %s177_s8 }
  0x16   : > { %s2572_s10 = scalar_lea.sflag [#allocation4], %s164_s28  ;;  %s2352_s11 = scalar_lea.hbm %s2562_s6, 16384 }
  0x17   : > { %p2353_p1 = scmp.ne.s32.totalorder %s2562_s6, %s2352_s11  ;;  %p2354_p2 = pneg %p2568_p0 }
  0x18   : > { %s2357_s21 = scalar_lea.hbm %s2823_s1, 32768  ;;  %p2358_p4 = scmp.lt.u32.totalorder %s2562_s6, %s2823_s1 }
  0x19   : > { %p2355_p3 = pnand %p2354_p2, %p2353_p1  ;;  %p2359_p6 = scmp.lt.u32.totalorder %s2357_s21, %s2352_s11 }
  0x1a   : > { %p2361_p10 = scmp.lt.u32.totalorder %s2352_s11, %s2562_s6 }
  0x1b   : > { %p2356_p5 = pneg %p2355_p3  ;;  %p2360_p7 = por %p2359_p6, %p2358_p4 }
  0x1d   : > { %p2362_p13 = por %p2361_p10, %p2360_p7 }
  0x1f   : > { %p2363_p12 = pnand %p2362_p13, %p2356_p5 }
  0x21   : > { %2366 = shalt.err (!%p2363_p12)
}
  0x22   : > { %s2367_s28 = scalar_lea.vmem %s2564_s8, 16384  ;;  %s2466_s29 = smov [#allocation3]  }
  0x23   : > { %p2368_p1 = scmp.ne.s32.totalorder %s2564_s8, %s2367_s28  ;;  %s2372_s30 = sshll.u32 %s2466_s29, 4  ;;  %s2373_s30 = int_to_ptr.vmem [resolvable:$false] %s2372_s30 }
  0x24   : > { %s2374_s4 = scalar_lea.vmem %s2373_s30, 32768  ;;  %p2375_p9 = scmp.lt.s32.totalorder %s2564_s8, %s2373_s30 }
  0x25   : > { %p2370_p3 = pnand %p2368_p1, %p2354_p2  ;;  %p2376_p4 = scmp.lt.s32.totalorder %s2374_s4, %s2367_s28 }
  0x27   : > { %p2371_p11 = pneg %p2370_p3  ;;  %p2377_p6 = por %p2376_p4, %p2375_p9 }
  0x29   : > { %p2378_p7 = pnand %p2377_p6, %p2371_p11 }
  0x2b   : > { %2381 = shalt.err (!%p2378_p7)
}
  0x2c   : > { %s2467_s5 = smov 128   ;;  %s2468_s7 = smov 64  }
  0x2d   : > { %s2469_s11 = smov 4   ;;  %p1845_p12 = scmp.ge.s32.totalorder %s2464_s17, 1 }
  0x2e   : > { %2164 = dma.hbm_to_vmem [thread:$0]  (!%p2568_p0), %s2562_s6, 16384, %s2564_s8, %s2572_s10, %s2467_s5, %s2468_s7, %s2469_s11  }
  0x2f   : > { %p191_p2 = scmp.lt.s32.totalorder %s2464_s17, 3 }
  0x31   : > { %p192_p5 = pnand %p1845_p12, %p191_p2 }
  0x32   : > { %s2603_s18 = sand.u32 (!%p192_p5), 1, %s2448_s13  }
  0x33   : > { %195 = sbr.rel (%p192_p5) target bundleno = 434 (0x1b2), region = 32  ;;  %s1846_s19 = sshll.u32 (!%p192_p5), %s2603_s18, 10 }
  0x34   : > { %s198_s21 = scalar_lea.sflag (!%p192_p5), [#allocation4], %s2603_s18  ;;  %s2607_s22 = scalar_lea.vmem (!%p192_p5), [#allocation3], %s1846_s19 }
  0x3a   : > { %2435 = dma.done.wait (%p2540_p8), %s198_s21, 16384  }
  0x3b   : > { %2437 = vsyncadd (%p2540_p8), %s198_s21, 4294950912  ;;  %v2224_v0 = vld [vmem:[%s2607_s22 + $0x40] sm:$0xff]   ;;  %v2228_v4 = vld [vmem:[%s2607_s22 + $0x48] sm:$0xff]   ;;  %v2470_v24 = vmov 1983009808   ;;  %v264_v26 = vlaneseq  ;;  %p239_p8 = scmp.lt.s32.totalorder %s2456_s15, 1 }
  0x3c   : > { %v2225_v1 = vld [vmem:[%s2607_s22 + $0xc0] sm:$0xff]   ;;  %1981 = vmatprep.subr.bf16.mxu0 %v2224_v0  ;;  %v2229_v5 = vld [vmem:[%s2607_s22 + $0xc8] sm:$0xff]   ;;  %v2232_v8 = vld [vmem:[%s2607_s22 + $0x50] sm:$0xff]   ;;  %v262_v25 = vunpack.c.l.s4 %v2470_v24  ;;  %s1847_s4 = sshll.u32 %s2603_s18, 1  ;;  %s1978_s19 = sshll.u32 %s2456_s15, 5 }
  0x3d   : > { %v2226_v2 = vld [vmem:[%s2607_s22] sm:$0xff]   ;;  %2003 = vmatprep.subr.bf16.mxu1 %v2225_v1  ;;  %v2230_v6 = vld [vmem:[%s2607_s22 + $0x8] sm:$0xff]   ;;  %v2233_v9 = vld [vmem:[%s2607_s22 + $0xd0] sm:$0xff]   ;;  %v265_v32 = vshrl.u32 %v264_v26, 7  ;;  %s240_s30 = scalar_select %p239_p8, %s2456_s15, 1 }
  0x3e   : > { %v2227_v3 = vld [vmem:[%s2607_s22 + $0x80] sm:$0xff]   ;;  %1982 = vmatpush3.bf16.msra.mxu0 %v2226_v2  ;;  %v2231_v7 = vld [vmem:[%s2607_s22 + $0x88] sm:$0xff]   ;;  %v2234_v10 = vld [vmem:[%s2607_s22 + $0x10] sm:$0xff]   ;;  %v263_v31 = vunpack.c.0.s8 %v262_v25  ;;  %s231_s21 = scalar_lea.vmem [#allocation6], %s1847_s4  ;;  %s2773_s8 = scalar_lea.hbm %s2825_s3, %s1978_s19 }
  0x3f   : > { %2004 = vmatpush3.bf16.msra.mxu1 %v2227_v3  ;;  %1983 = vmatprep.subr.bf16.mxu0 %v2228_v4  ;;  %v2235_v11 = vld [vmem:[%s2607_s22 + $0x90] sm:$0xff]   ;;  %v2236_v12 = vld [vmem:[%s2607_s22 + $0x58] sm:$0xff]   ;;  %v2240_v16 = vld [vmem:[%s2607_s22 + $0x60] sm:$0xff]   ;;  %s241_s11 = scalar_lea.vmem %s2824_s2, %s240_s30  ;;  %s1721_s9 = scalar_lea.sflag [#allocation5], %s2603_s18 }
  0x40   : > { %2005 = vmatprep.subr.bf16.mxu1 %v2229_v5  ;;  %v2237_v13 = vld [vmem:[%s2607_s22 + $0xd8] sm:$0xff]   ;;  %v2241_v17 = vld [vmem:[%s2607_s22 + $0xe0] sm:$0xff]   ;;  %v2244_v20 = vld [vmem:[%s2607_s22 + $0x68] sm:$0xff]   ;;  %v2645_v37 = vsub.s32 %v263_v31, %v265_v32  ;;  %p2832_p11 = scmp.ne.s32.totalorder %s2829_s25, 0  ;;  %s2472_s15 = smov [#allocation6]  }
  0x41   : > { %v2238_v14 = vld [vmem:[%s2607_s22 + $0x18] sm:$0xff]   ;;  %v2242_v18 = vld [vmem:[%s2607_s22 + $0x20] sm:$0xff]   ;;  %v2245_v21 = vld [vmem:[%s2607_s22 + $0xe8] sm:$0xff]   ;;  %s2386_s23 = sshll.u32 %s2472_s15, 4  ;;  %s2387_s23 = int_to_ptr.vmem [resolvable:$false] %s2386_s23 }
  0x42   : > { %1984 = vmatpush3.bf16.msra.mxu0 %v2230_v6  ;;  %v2239_v15 = vld [vmem:[%s2607_s22 + $0x98] sm:$0xff]   ;;  %v2243_v19 = vld [vmem:[%s2607_s22 + $0xa0] sm:$0xff]   ;;  %v2246_v22 = vld [vmem:[%s2607_s22 + $0x28] sm:$0xff]   ;;  %s2388_s28 = scalar_lea.vmem %s2387_s23, 64 }
  0x43   : > { %2006 = vmatpush3.bf16.msra.mxu1 %v2231_v7  ;;  %1985 = vmatprep.subr.bf16.mxu0 %v2232_v8  ;;  %v2247_v23 = vld [vmem:[%s2607_s22 + $0xa8] sm:$0xff]   ;;  %v2248_v27 = vld [vmem:[%s2607_s22 + $0x70] sm:$0xff]   ;;  %v2252_v33 = vld [vmem:[%s2607_s22 + $0x78] sm:$0xff]  }
  0x44   : > { %2007 = vmatprep.subr.bf16.mxu1 %v2233_v9  ;;  %v2249_v28 = vld [vmem:[%s2607_s22 + $0xf0] sm:$0xff]   ;;  %v2253_v34 = vld [vmem:[%s2607_s22 + $0xf8] sm:$0xff]   ;;  %v2256_v40 = vld [vmem:[%s2607_s22 + $0x140] sm:$0xff]  }
  0x45   : > { %v2250_v29 = vld [vmem:[%s2607_s22 + $0x30] sm:$0xff]   ;;  %v2254_v35 = vld [vmem:[%s2607_s22 + $0x38] sm:$0xff]   ;;  %v2257_v41 = vld [vmem:[%s2607_s22 + $0x1c0] sm:$0xff]  }
  0x46   : > { %1986 = vmatpush3.bf16.msra.mxu0 %v2234_v10  ;;  %v2251_v30 = vld [vmem:[%s2607_s22 + $0xb0] sm:$0xff]   ;;  %v2255_v36 = vld [vmem:[%s2607_s22 + $0xb8] sm:$0xff]   ;;  %v2258_v49 = vld [vmem:[%s2607_s22 + $0x100] sm:$0xff]  }
  0x47   : > { %2008 = vmatpush3.bf16.msra.mxu1 %v2235_v11  ;;  %1987 = vmatprep.subr.bf16.mxu0 %v2236_v12  ;;  %v248_v38 = vld [vmem:[%s2822_s0] sm:$0xff]  ;;  %v2260_v51 = vld [vmem:[%s2607_s22 + $0x148] sm:$0xff]   ;;  %v2264_v56 = vld [vmem:[%s2607_s22 + $0x150] sm:$0xff]  }
  0x48   : > { %2009 = vmatprep.subr.bf16.mxu1 %v2237_v13  ;;  %v252_v39 = vmax.f32 %v248_v38, 0.0  ;;  %v2259_v53 = vld [vmem:[%s2607_s22 + $0x180] sm:$0xff]   ;;  %v2261_v54 = vld [vmem:[%s2607_s22 + $0x1c8] sm:$0xff]   ;;  %v2265_v58 = vld [vmem:[%s2607_s22 + $0x1d0] sm:$0xff]  }
  0x49   : > { %v2262_v55 = vld [vmem:[%s2607_s22 + $0x108] sm:$0xff]   ;;  %v2266_v59 = vld [vmem:[%s2607_s22 + $0x110] sm:$0xff]   ;;  %v2268_v60 = vld [vmem:[%s2607_s22 + $0x158] sm:$0xff]  }
  0x4a   : > { %1988 = vmatpush3.bf16.msra.mxu0 %v2238_v14  ;;  %v267_v42 = vrot.slane %v252_v39, %v2645_v37  ;;  %v260_v43 = vcombine.high %v252_v39, %v252_v39  ;;  %v2263_v57 = vld [vmem:[%s2607_s22 + $0x188] sm:$0xff]   ;;  %v2267_v61 = vld [vmem:[%s2607_s22 + $0x190] sm:$0xff]   ;;  %v2269_v62 = vld [vmem:[%s2607_s22 + $0x1d8] sm:$0xff]  }
  0x4b   : > { %2010 = vmatpush3.bf16.msra.mxu1 %v2239_v15  ;;  %1989 = vmatprep.subr.bf16.mxu0 %v2240_v16  ;;  %v2270_v63 = vld [vmem:[%s2607_s22 + $0x118] sm:$0xff]   ;;  %v2272_v0 = vld [vmem:[%s2607_s22 + $0x160] sm:$0xff]   ;;  %v2276_v4 = vld [vmem:[%s2607_s22 + $0x168] sm:$0xff]  }
  0x4c   : > { %2011 = vmatprep.subr.bf16.mxu1 %v2241_v17  ;;  %v275_v44 = vcombine.high %v267_v42, %v267_v42  ;;  %v274_v45 = vrot.slane %v260_v43, %v2645_v37  ;;  %v344_v46 = vpack.c.bf16 %v267_v42, %v267_v42  ;;  %v2271_v1 = vld [vmem:[%s2607_s22 + $0x198] sm:$0xff]   ;;  %v2273_v2 = vld [vmem:[%s2607_s22 + $0x1e0] sm:$0xff]   ;;  %v2277_v6 = vld [vmem:[%s2607_s22 + $0x1e8] sm:$0xff]  }
  0x4d   : > { %v2274_v3 = vld [vmem:[%s2607_s22 + $0x120] sm:$0xff]   ;;  %v2278_v7 = vld [vmem:[%s2607_s22 + $0x128] sm:$0xff]   ;;  %v2280_v8 = vld [vmem:[%s2607_s22 + $0x170] sm:$0xff]  }
  0x4e   : > { %1990 = vmatpush3.bf16.msra.mxu0 %v2242_v18  ;;  %v345_v47 = vpack.c.bf16 %v275_v44, %v275_v44  ;;  %v276_v48 = vcombine.high %v274_v45, %v274_v45  ;;  %v346_v50 = vpack.c.bf16 %v274_v45, %v274_v45  ;;  %v2275_v5 = vld [vmem:[%s2607_s22 + $0x1a0] sm:$0xff]   ;;  %v2279_v9 = vld [vmem:[%s2607_s22 + $0x1a8] sm:$0xff]   ;;  %v2281_v10 = vld [vmem:[%s2607_s22 + $0x1f0] sm:$0xff]  }
  0x4f   : > { %2012 = vmatpush3.bf16.msra.mxu1 %v2243_v19  ;;  %1991 = vmatprep.subr.bf16.mxu0 %v2244_v20  ;;  %v2282_v11 = vld [vmem:[%s2607_s22 + $0x130] sm:$0xff]   ;;  %v2284_v12 = vld [vmem:[%s2607_s22 + $0x178] sm:$0xff]   ;;  %v249_v13 = vld [vmem:[%s2822_s0 + $0x8] sm:$0xff] }
  0x50   : > { %2013 = vmatprep.subr.bf16.mxu1 %v2245_v21  ;;  %1417 = vmatprep.mubr.bf16.mxu0 %v345_v47  ;;  %v347_v52 = vpack.c.bf16 %v276_v48, %v276_v48  ;;  %v2283_v14 = vld [vmem:[%s2607_s22 + $0x1b0] sm:$0xff]   ;;  %v253_v15 = vmax.f32 %v249_v13, 0.0  ;;  %v2285_v16 = vld [vmem:[%s2607_s22 + $0x1f8] sm:$0xff]   ;;  %v2288_v20 = vld [vmem:[%s2607_s22 + $0x240] sm:$0xff]  }
  0x51   : > { %v2286_v17 = vld [vmem:[%s2607_s22 + $0x138] sm:$0xff]   ;;  %v2289_v25 = vld [vmem:[%s2607_s22 + $0x2c0] sm:$0xff]   ;;  %v2297_v38 = vld [vmem:[%s2607_s22 + $0x2d0] sm:$0xff]  }
  0x52   : > { %1992 = vmatpush3.bf16.msra.mxu0 %v2246_v22  ;;  %1457 = vmatprep.mubr.bf16.mxu1 %v347_v52  ;;  %v284_v18 = vrot.slane %v253_v15, %v2645_v37  ;;  %v277_v19 = vcombine.high %v253_v15, %v253_v15  ;;  %v2287_v21 = vld [vmem:[%s2607_s22 + $0x1b8] sm:$0xff]   ;;  %v2291_v32 = vld [vmem:[%s2607_s22 + $0x280] sm:$0xff]   ;;  %v2298_v39 = vld [vmem:[%s2607_s22 + $0x210] sm:$0xff]  }
  0x53   : > { %2014 = vmatpush3.bf16.msra.mxu1 %v2247_v23  ;;  %1993 = vmatprep.subr.bf16.mxu0 %v2248_v27  ;;  %v2301_v42 = vld [vmem:[%s2607_s22 + $0x2d8] sm:$0xff]   ;;  %v2304_v44 = vld [vmem:[%s2607_s22 + $0x260] sm:$0xff]   ;;  %v2308_v48 = vld [vmem:[%s2607_s22 + $0x268] sm:$0xff]  }
  0x54   : > { %2015 = vmatprep.subr.bf16.mxu1 %v2249_v28  ;;  %v292_v22 = vcombine.high %v284_v18, %v284_v18  ;;  %v291_v23 = vrot.slane %v277_v19, %v2645_v37  ;;  %v348_v24 = vpack.c.bf16 %v284_v18, %v284_v18  ;;  %v2290_v28 = vld [vmem:[%s2607_s22 + $0x200] sm:$0xff]   ;;  %v2302_v43 = vld [vmem:[%s2607_s22 + $0x218] sm:$0xff]   ;;  %v2312_v52 = vld [vmem:[%s2607_s22 + $0x270] sm:$0xff]  }
  0x55   : > { %v2303_v45 = vld [vmem:[%s2607_s22 + $0x298] sm:$0xff]   ;;  %v2306_v47 = vld [vmem:[%s2607_s22 + $0x220] sm:$0xff]   ;;  %v2325_v13 = vld [vmem:[%s2607_s22 + $0x3c8] sm:$0xff]  }
  0x56   : > { %1994 = vmatpush3.bf16.msra.mxu0 %v2250_v29  ;;  %v349_v26 = vpack.c.bf16 %v292_v22, %v292_v22  ;;  %v293_v27 = vcombine.high %v291_v23, %v291_v23  ;;  %v350_v29 = vpack.c.bf16 %v291_v23, %v291_v23  ;;  %v2328_v15 = vld [vmem:[%s2607_s22 + $0x350] sm:$0xff]   ;;  %v2332_v19 = vld [vmem:[%s2607_s22 + $0x358] sm:$0xff]   ;;  %v2336_v23 = vld [vmem:[%s2607_s22 + $0x360] sm:$0xff]  }
  0x57   : > { %2016 = vmatpush3.bf16.msra.mxu1 %v2251_v30  ;;  %1995 = vmatprep.subr.bf16.mxu0 %v2252_v33  ;;  %v2292_v30 = vld [vmem:[%s2607_s22 + $0x248] sm:$0xff]   ;;  %v2330_v18 = vld [vmem:[%s2607_s22 + $0x310] sm:$0xff]   ;;  %v2334_v22 = vld [vmem:[%s2607_s22 + $0x318] sm:$0xff]  }
  0x58   : > { %2017 = vmatprep.subr.bf16.mxu1 %v2253_v34  ;;  %v351_v31 = vpack.c.bf16 %v293_v27, %v293_v27  ;;  %v2293_v33 = vld [vmem:[%s2607_s22 + $0x2c8] sm:$0xff]  }
  0x59   : > { %v2294_v34 = vld [vmem:[%s2607_s22 + $0x208] sm:$0xff]  }
  0x5a   : > { %1996 = vmatpush3.bf16.msra.mxu0 %v2254_v35  ;;  %v2296_v35 = vld [vmem:[%s2607_s22 + $0x250] sm:$0xff]   ;;  %v2340_v27 = vld [vmem:[%s2607_s22 + $0x368] sm:$0xff]  }
  0x5b   : > { %2018 = vmatpush3.bf16.msra.mxu1 %v2255_v36  ;;  %2025 = vmatprep.subr.bf16.mxu0 %v2256_v40  ;;  %v2295_v36 = vld [vmem:[%s2607_s22 + $0x288] sm:$0xff]   ;;  %v2300_v40 = vld [vmem:[%s2607_s22 + $0x258] sm:$0xff]  }
  0x5c   : > { %2047 = vmatprep.subr.bf16.mxu1 %v2257_v41  ;;  %v2299_v41 = vld [vmem:[%s2607_s22 + $0x290] sm:$0xff]  }
  0x5d   : > { %1418 = vmatmul.mubr.bf16.vlgmr.msra.gmra.mrb[0].mxu0 %v344_v46  ;;  %v2305_v46 = vld [vmem:[%s2607_s22 + $0x2e0] sm:$0xff]  }
  0x5e   : > { %2026 = vmatpush3.bf16.msra.mxu0 %v2258_v49  ;;  %1458 = vmatmul.mubr.bf16.vlgmr.msra.gmra.mrb[0].mxu1 %v346_v50  ;;  %v2307_v49 = vld [vmem:[%s2607_s22 + $0x2a0] sm:$0xff]   ;;  %v2309_v50 = vld [vmem:[%s2607_s22 + $0x2e8] sm:$0xff]  }
  0x5f   : > { %2027 = vmatprep.subr.bf16.mxu0 %v2260_v51  ;;  %2048 = vmatpush3.bf16.msra.mxu1 %v2259_v53  ;;  %v2310_v51 = vld [vmem:[%s2607_s22 + $0x228] sm:$0xff]  }
  0x60   : > { %2049 = vmatprep.subr.bf16.mxu1 %v2261_v54  ;;  %1497 = vmatprep.mubr.bf16.mxu0 %v349_v26  ;;  %v2311_v53 = vld [vmem:[%s2607_s22 + $0x2a8] sm:$0xff]   ;;  %v2313_v54 = vld [vmem:[%s2607_s22 + $0x2f0] sm:$0xff]   ;;  %v2338_v26 = vld [vmem:[%s2607_s22 + $0x320] sm:$0xff]  }
  0x61   : > { %1537 = vmatprep.mubr.bf16.mxu1 %v351_v31  ;;  %v2344_v31 = vld [vmem:[%s2607_s22 + $0x370] sm:$0xff]  }
  0x62   : > { %2028 = vmatpush3.bf16.msra.mxu0 %v2262_v55  ;;  %v2314_v55 = vld [vmem:[%s2607_s22 + $0x230] sm:$0xff]  }
  0x63   : > { %2029 = vmatprep.subr.bf16.mxu0 %v2264_v56  ;;  %2050 = vmatpush3.bf16.msra.mxu1 %v2263_v57  ;;  %v2316_v56 = vld [vmem:[%s2607_s22 + $0x278] sm:$0xff]   ;;  %v250_v57 = vld [vmem:[%s2822_s0 + $0x10] sm:$0xff] }
  0x64   : > { %2051 = vmatprep.subr.bf16.mxu1 %v2265_v58  ;;  %v2315_v58 = vld [vmem:[%s2607_s22 + $0x2b0] sm:$0xff]  }
  0x66   : > { %2030 = vmatpush3.bf16.msra.mxu0 %v2266_v59  ;;  %v254_v59 = vmax.f32 %v250_v57, 0.0 }
  0x67   : > { %2031 = vmatprep.subr.bf16.mxu0 %v2268_v60  ;;  %2052 = vmatpush3.bf16.msra.mxu1 %v2267_v61  ;;  %v2317_v60 = vld [vmem:[%s2607_s22 + $0x2f8] sm:$0xff]  }
  0x68   : > { %2053 = vmatprep.subr.bf16.mxu1 %v2269_v62  ;;  %v2318_v61 = vld [vmem:[%s2607_s22 + $0x238] sm:$0xff]   ;;  %v301_v62 = vrot.slane %v254_v59, %v2645_v37 }
  0x6a   : > { %2032 = vmatpush3.bf16.msra.mxu0 %v2270_v63  ;;  %v294_v63 = vcombine.high %v254_v59, %v254_v59 }
  0x6b   : > { %2033 = vmatprep.subr.bf16.mxu0 %v2272_v0  ;;  %2054 = vmatpush3.bf16.msra.mxu1 %v2271_v1  ;;  %v2320_v0 = vld [vmem:[%s2607_s22 + $0x340] sm:$0xff]   ;;  %v2319_v1 = vld [vmem:[%s2607_s22 + $0x2b8] sm:$0xff]  }
  0x6c   : > { %2055 = vmatprep.subr.bf16.mxu1 %v2273_v2  ;;  %v309_v2 = vcombine.high %v301_v62, %v301_v62 }
  0x6e   : > { %2034 = vmatpush3.bf16.msra.mxu0 %v2274_v3  ;;  %v308_v3 = vrot.slane %v294_v63, %v2645_v37 }
  0x6f   : > { %2035 = vmatprep.subr.bf16.mxu0 %v2276_v4  ;;  %2056 = vmatpush3.bf16.msra.mxu1 %v2275_v5  ;;  %v352_v4 = vpack.c.bf16 %v301_v62, %v301_v62  ;;  %v2321_v5 = vld [vmem:[%s2607_s22 + $0x3c0] sm:$0xff]  }
  0x70   : > { %2057 = vmatprep.subr.bf16.mxu1 %v2277_v6  ;;  %v353_v6 = vpack.c.bf16 %v309_v2, %v309_v2 }
  0x72   : > { %2036 = vmatpush3.bf16.msra.mxu0 %v2278_v7  ;;  %v310_v7 = vcombine.high %v308_v3, %v308_v3 }
  0x73   : > { %2037 = vmatprep.subr.bf16.mxu0 %v2280_v8  ;;  %2058 = vmatpush3.bf16.msra.mxu1 %v2279_v9  ;;  %v2322_v8 = vld [vmem:[%s2607_s22 + $0x300] sm:$0xff]   ;;  %v354_v9 = vpack.c.bf16 %v308_v3, %v308_v3 }
  0x74   : > { %2059 = vmatprep.subr.bf16.mxu1 %v2281_v10  ;;  %v2324_v10 = vld [vmem:[%s2607_s22 + $0x348] sm:$0xff]  }
  0x76   : > { %2038 = vmatpush3.bf16.msra.mxu0 %v2282_v11  ;;  %v355_v11 = vpack.c.bf16 %v310_v7, %v310_v7 }
  0x77   : > { %2039 = vmatprep.subr.bf16.mxu0 %v2284_v12  ;;  %2060 = vmatpush3.bf16.msra.mxu1 %v2283_v14  ;;  %v2323_v12 = vld [vmem:[%s2607_s22 + $0x380] sm:$0xff]   ;;  %v2326_v14 = vld [vmem:[%s2607_s22 + $0x308] sm:$0xff]  }
  0x78   : > { %2061 = vmatprep.subr.bf16.mxu1 %v2285_v16  ;;  %v2327_v16 = vld [vmem:[%s2607_s22 + $0x388] sm:$0xff]  }
  0x7a   : > { %2040 = vmatpush3.bf16.msra.mxu0 %v2286_v17  ;;  %v2329_v17 = vld [vmem:[%s2607_s22 + $0x3d0] sm:$0xff]  }
  0x7b   : > { %2069 = vmatprep.subr.bf16.mxu0 %v2288_v20  ;;  %2062 = vmatpush3.bf16.msra.mxu1 %v2287_v21  ;;  %v2331_v20 = vld [vmem:[%s2607_s22 + $0x390] sm:$0xff]   ;;  %v2333_v21 = vld [vmem:[%s2607_s22 + $0x3d8] sm:$0xff]  }
  0x7c   : > { %2091 = vmatprep.subr.bf16.mxu1 %v2289_v25  ;;  %v2337_v25 = vld [vmem:[%s2607_s22 + $0x3e0] sm:$0xff]  }
  0x7d   : > { %1498 = vmatmul.mubr.bf16.vlgmr.msra.gmra.mrb[4].mxu0 %v348_v24  ;;  %v2335_v24 = vld [vmem:[%s2607_s22 + $0x398] sm:$0xff]  }
  0x7e   : > { %2070 = vmatpush3.bf16.msra.mxu0 %v2290_v28  ;;  %1538 = vmatmul.mubr.bf16.vlgmr.msra.gmra.mrb[4].mxu1 %v350_v29  ;;  %v2339_v28 = vld [vmem:[%s2607_s22 + $0x3a0] sm:$0xff]   ;;  %v2341_v29 = vld [vmem:[%s2607_s22 + $0x3e8] sm:$0xff]  }
  0x7f   : > { %2071 = vmatprep.subr.bf16.mxu0 %v2292_v30  ;;  %2092 = vmatpush3.bf16.msra.mxu1 %v2291_v32  ;;  %v2342_v30 = vld [vmem:[%s2607_s22 + $0x328] sm:$0xff]  }
  0x80   : > { %2093 = vmatprep.subr.bf16.mxu1 %v2293_v33  ;;  %1577 = vmatprep.mubr.bf16.mxu0 %v353_v6  ;;  %v2343_v32 = vld [vmem:[%s2607_s22 + $0x3a8] sm:$0xff]   ;;  %v2345_v33 = vld [vmem:[%s2607_s22 + $0x3f0] sm:$0xff]  }
  0x81   : > { %1617 = vmatprep.mubr.bf16.mxu1 %v355_v11 }
  0x82   : > { %2072 = vmatpush3.bf16.msra.mxu0 %v2294_v34  ;;  %v2346_v34 = vld [vmem:[%s2607_s22 + $0x330] sm:$0xff]  }
  0x83   : > { %2073 = vmatprep.subr.bf16.mxu0 %v2296_v35  ;;  %2094 = vmatpush3.bf16.msra.mxu1 %v2295_v36  ;;  %v2348_v35 = vld [vmem:[%s2607_s22 + $0x378] sm:$0xff]   ;;  %v2347_v36 = vld [vmem:[%s2607_s22 + $0x3b0] sm:$0xff]  }
  0x84   : > { %2095 = vmatprep.subr.bf16.mxu1 %v2297_v38  ;;  %v251_v38 = vld [vmem:[%s2822_s0 + $0x18] sm:$0xff] }
  0x86   : > { %2074 = vmatpush3.bf16.msra.mxu0 %v2298_v39  ;;  %v2349_v39 = vld [vmem:[%s2607_s22 + $0x3f8] sm:$0xff]  }
  0x87   : > { %2075 = vmatprep.subr.bf16.mxu0 %v2300_v40  ;;  %2096 = vmatpush3.bf16.msra.mxu1 %v2299_v41  ;;  %v255_v40 = vmax.f32 %v251_v38, 0.0  ;;  %v2350_v41 = vld [vmem:[%s2607_s22 + $0x338] sm:$0xff]  }
  0x88   : > { %2097 = vmatprep.subr.bf16.mxu1 %v2301_v42  ;;  %v1976_v38 = vld [vmem:[%s241_s11] ss:$0 sm:$0xff] }
  0x89   : > { %v318_v42 = vrot.slane %v255_v40, %v2645_v37 }
  0x8a   : > { %2076 = vmatpush3.bf16.msra.mxu0 %v2302_v43  ;;  %v311_v43 = vcombine.high %v255_v40, %v255_v40 }
  0x8b   : > { %2077 = vmatprep.subr.bf16.mxu0 %v2304_v44  ;;  %2098 = vmatpush3.bf16.msra.mxu1 %v2303_v45  ;;  %v2351_v44 = vld [vmem:[%s2607_s22 + $0x3b8] sm:$0xff]   ;;  %v326_v45 = vcombine.high %v318_v42, %v318_v42  ;;  %s1734_s22 = sshll.u32 %s231_s21, 4  ;;  %s2775_s22 = int_to_ptr.vmem [resolvable:$true] %s1734_s22 }
  0x8c   : > { %2099 = vmatprep.subr.bf16.mxu1 %v2305_v46  ;;  %v325_v46 = vrot.slane %v311_v43, %v2645_v37  ;;  %s2382_s10 = scalar_lea.vmem %s2775_s22, 32  ;;  %p2389_p13 = scmp.lt.s32.totalorder %s2775_s22, %s2387_s23 }
  0x8d   : > { %p2383_p9 = scmp.ne.s32.totalorder %s2775_s22, %s2382_s10  ;;  %p2390_p1 = scmp.lt.s32.totalorder %s2388_s28, %s2382_s10 }
  0x8e   : > { %2078 = vmatpush3.bf16.msra.mxu0 %v2306_v47  ;;  %v356_v47 = vpack.c.bf16 %v318_v42, %v318_v42 }
  0x8f   : > { %2079 = vmatprep.subr.bf16.mxu0 %v2308_v48  ;;  %2100 = vmatpush3.bf16.msra.mxu1 %v2307_v49  ;;  %v357_v48 = vpack.c.bf16 %v326_v45, %v326_v45  ;;  %v327_v49 = vcombine.high %v325_v46, %v325_v46  ;;  %p2384_p0 = pnand %p2383_p9, %p2832_p11  ;;  %p2391_p3 = por %p2390_p1, %p2389_p13 }
  0x90   : > { %2101 = vmatprep.subr.bf16.mxu1 %v2309_v50  ;;  %v358_v50 = vpack.c.bf16 %v325_v46, %v325_v46 }
  0x91   : > { %p2385_p10 = pneg %p2384_p0 }
  0x92   : > { %2080 = vmatpush3.bf16.msra.mxu0 %v2310_v51  ;;  %v359_v51 = vpack.c.bf16 %v327_v49, %v327_v49 }
  0x93   : > { %2081 = vmatprep.subr.bf16.mxu0 %v2312_v52  ;;  %2102 = vmatpush3.bf16.msra.mxu1 %v2311_v53  ;;  %v2471_v52 = vmov 0.0   ;;  %p2392_p4 = pnand %p2391_p3, %p2385_p10 }
  0x94   : > { %2103 = vmatprep.subr.bf16.mxu1 %v2313_v54  ;;  %247 = vst [vmem:[#allocation2] sm:$0x3] %v2471_v52 }
  0x96   : > { %2082 = vmatpush3.bf16.msra.mxu0 %v2314_v55 }
  0x97   : > { %2083 = vmatprep.subr.bf16.mxu0 %v2316_v56  ;;  %2104 = vmatpush3.bf16.msra.mxu1 %v2315_v58 }
  0x98   : > { %2105 = vmatprep.subr.bf16.mxu1 %v2317_v60 }
  0x9a   : > { %2084 = vmatpush3.bf16.msra.mxu0 %v2318_v61 }
  0x9b   : > { %2113 = vmatprep.subr.bf16.mxu0 %v2320_v0  ;;  %2106 = vmatpush3.bf16.msra.mxu1 %v2319_v1 }
  0x9c   : > { %2135 = vmatprep.subr.bf16.mxu1 %v2321_v5 }
  0x9d   : > { %1578 = vmatmul.mubr.bf16.vlgmr.msra.gmra.mrb[8].mxu0 %v352_v4 }
  0x9e   : > { %2114 = vmatpush3.bf16.msra.mxu0 %v2322_v8  ;;  %1618 = vmatmul.mubr.bf16.vlgmr.msra.gmra.mrb[8].mxu1 %v354_v9 }
  0x9f   : > { %2115 = vmatprep.subr.bf16.mxu0 %v2324_v10  ;;  %2136 = vmatpush3.bf16.msra.mxu1 %v2323_v12 }
  0xa0   : > { %2137 = vmatprep.subr.bf16.mxu1 %v2325_v13  ;;  %1657 = vmatprep.mubr.bf16.mxu0 %v357_v48 }
  0xa1   : > { %1697 = vmatprep.mubr.bf16.mxu1 %v359_v51 }
  0xa2   : > { %2116 = vmatpush3.bf16.msra.mxu0 %v2326_v14 }
  0xa3   : > { %2117 = vmatprep.subr.bf16.mxu0 %v2328_v15  ;;  %2138 = vmatpush3.bf16.msra.mxu1 %v2327_v16 }
  0xa4   : > { %2139 = vmatprep.subr.bf16.mxu1 %v2329_v17 }
  0xa6   : > { %2118 = vmatpush3.bf16.msra.mxu0 %v2330_v18 }
  0xa7   : > { %2119 = vmatprep.subr.bf16.mxu0 %v2332_v19  ;;  %2140 = vmatpush3.bf16.msra.mxu1 %v2331_v20 }
  0xa8   : > { %2141 = vmatprep.subr.bf16.mxu1 %v2333_v21 }
  0xaa   : > { %2120 = vmatpush3.bf16.msra.mxu0 %v2334_v22 }
  0xab   : > { %2121 = vmatprep.subr.bf16.mxu0 %v2336_v23  ;;  %2142 = vmatpush3.bf16.msra.mxu1 %v2335_v24 }
  0xac   : > { %2143 = vmatprep.subr.bf16.mxu1 %v2337_v25 }
  0xae   : > { %2122 = vmatpush3.bf16.msra.mxu0 %v2338_v26 }
  0xaf   : > { %2123 = vmatprep.subr.bf16.mxu0 %v2340_v27  ;;  %2144 = vmatpush3.bf16.msra.mxu1 %v2339_v28 }
  0xb0   : > { %2145 = vmatprep.subr.bf16.mxu1 %v2341_v29 }
  0xb2   : > { %2124 = vmatpush3.bf16.msra.mxu0 %v2342_v30 }
  0xb3   : > { %2125 = vmatprep.subr.bf16.mxu0 %v2344_v31  ;;  %2146 = vmatpush3.bf16.msra.mxu1 %v2343_v32 }
  0xb4   : > { %2147 = vmatprep.subr.bf16.mxu1 %v2345_v33  ;;  %v360_v33 = vld [vmem:[#allocation2] sm:$0x3] }
  0xb6   : > { %2126 = vmatpush3.bf16.msra.mxu0 %v2346_v34 }
  0xb7   : > { %2127 = vmatprep.subr.bf16.mxu0 %v2348_v35  ;;  %2148 = vmatpush3.bf16.msra.mxu1 %v2347_v36 }
  0xb8   : > { %2149 = vmatprep.subr.bf16.mxu1 %v2349_v39 }
  0xba   : > { %2128 = vmatpush3.bf16.msra.mxu0 %v2350_v41 }
  0xbb   : > { %2150 = vmatpush3.bf16.msra.mxu1 %v2351_v44 }
  0xbd   : > { %1658 = vmatmul.mubr.bf16.vlgmr.msra.gmra.mrb[12].mxu0 %v356_v47 }
  0xbe   : > { %1698 = vmatmul.mubr.bf16.vlgmr.msra.gmra.mrb[12].mxu1 %v358_v50 }
 0x130   : > { %v1997_v53 = vpop.f32.mrb[0].mxu0 }
 0x131   : > { %v1998_v54 = vpop.f32.mrb[1].mxu0  ;;  %v2019_v55 = vpop.f32.mrb[0].mxu1 }
 0x132   : > { %v1999_v56 = vadd.f32 %v1998_v54, %v1997_v53  ;;  %v2000_v57 = vpop.f32.mrb[2].mxu0  ;;  %v2020_v58 = vpop.f32.mrb[1].mxu1 }
 0x133   : > { %v2001_v37 = vpop.f32.mrb[3].mxu0  ;;  %v2021_v59 = vadd.f32 %v2020_v58, %v2019_v55  ;;  %v2022_v60 = vpop.f32.mrb[2].mxu1 }
 0x134   : > { %v2023_v61 = vpop.f32.mrb[3].mxu1 }
 0x135   : > { %v1460_v62 = vadd.f32 %v2021_v59, %v1999_v56 }
 0x150   : > { %v2041_v63 = vpop.f32.mrb[4].mxu0 }
 0x151   : > { %v2042_v0 = vpop.f32.mrb[5].mxu0  ;;  %v2063_v1 = vpop.f32.mrb[4].mxu1 }
 0x152   : > { %v2043_v2 = vadd.f32 %v2042_v0, %v2041_v63  ;;  %v2044_v3 = vpop.f32.mrb[6].mxu0  ;;  %v2064_v4 = vpop.f32.mrb[5].mxu1 }
 0x153   : > { %v2045_v5 = vpop.f32.mrb[7].mxu0  ;;  %v2065_v7 = vadd.f32 %v2064_v4, %v2063_v1  ;;  %v2066_v8 = vpop.f32.mrb[6].mxu1 }
 0x154   : > { %v1500_v6 = vadd.f32 %v2043_v2, %v1460_v62  ;;  %v2067_v9 = vpop.f32.mrb[7].mxu1 }
 0x156   : > { %v1540_v10 = vadd.f32 %v2065_v7, %v1500_v6 }
 0x170   : > { %v2085_v11 = vpop.f32.mrb[8].mxu0 }
 0x171   : > { %v2086_v12 = vpop.f32.mrb[9].mxu0  ;;  %v2107_v13 = vpop.f32.mrb[8].mxu1 }
 0x172   : > { %v2087_v14 = vadd.f32 %v2086_v12, %v2085_v11  ;;  %v2088_v15 = vpop.f32.mrb[10].mxu0  ;;  %v2108_v16 = vpop.f32.mrb[9].mxu1 }
 0x173   : > { %v2089_v17 = vpop.f32.mrb[11].mxu0  ;;  %v2109_v19 = vadd.f32 %v2108_v16, %v2107_v13  ;;  %v2110_v20 = vpop.f32.mrb[10].mxu1 }
 0x174   : > { %v1580_v18 = vadd.f32 %v2087_v14, %v1540_v10  ;;  %v2111_v21 = vpop.f32.mrb[11].mxu1 }
 0x176   : > { %v1620_v22 = vadd.f32 %v2109_v19, %v1580_v18 }
 0x190   : > { %v2129_v23 = vpop.f32.mrb[12].mxu0 }
 0x191   : > { %v2130_v24 = vpop.f32.mrb[13].mxu0  ;;  %v2151_v25 = vpop.f32.mrb[12].mxu1 }
 0x192   : > { %v2131_v26 = vadd.f32 %v2130_v24, %v2129_v23  ;;  %v2132_v27 = vpop.f32.mrb[14].mxu0  ;;  %v2152_v28 = vpop.f32.mrb[13].mxu1 }
 0x193   : > { %v2133_v29 = vpop.f32.mrb[15].mxu0  ;;  %v2153_v31 = vadd.f32 %v2152_v28, %v2151_v25  ;;  %v2154_v32 = vpop.f32.mrb[14].mxu1 }
 0x194   : > { %v1660_v30 = vadd.f32 %v2131_v26, %v1620_v22  ;;  %v2155_v34 = vpop.f32.mrb[15].mxu1 }
 0x196   : > { %v1700_v35 = vadd.f32 %v2153_v31, %v1660_v30 }
 0x198   : > { %v1705_v36 = vadd.f32 %v1700_v35, %v360_v33 }
 0x19a   : > { %1706 = vst [vmem:[#allocation2] sm:$0x3] %v1705_v36 }
 0x1a1   : > { %v1710_v39 = vld [vmem:[#allocation2] sm:$0x3] }
 0x1a2   : > { %v1718_v40 = vadd.f32 %v1976_v38, %v1710_v39 }
 0x1a4   : > { %1719 = vst [vmem:[%s231_s21] sm:$0x3] %v1718_v40 }
 0x1a5   : > { %2395 = shalt.err (!%p2392_p4)
}
 0x1a6   : > { %s2396_s18 = scalar_lea.hbm %s2773_s8, 32  ;;  %s2400_s4 = scalar_lea.hbm %s2825_s3, 64 }
 0x1a7   : > { %p2397_p6 = scmp.ne.s32.totalorder %s2773_s8, %s2396_s18  ;;  %p2401_p2 = scmp.lt.u32.totalorder %s2773_s8, %s2825_s3 }
 0x1a8   : > { %p2402_p5 = scmp.lt.u32.totalorder %s2400_s4, %s2396_s18  ;;  %p2404_p9 = scmp.lt.u32.totalorder %s2396_s18, %s2773_s8 }
 0x1a9   : > { %p2398_p7 = pnand %p2397_p6, %p2832_p11 }
 0x1aa   : > { %p2403_p8 = por %p2402_p5, %p2401_p2 }
 0x1ab   : > { %p2399_p12 = pneg %p2398_p7 }
 0x1ac   : > { %p2405_p0 = por %p2404_p9, %p2403_p8 }
 0x1ae   : > { %p2406_p10 = pnand %p2405_p0, %p2399_p12 }
 0x1b0   : > { %2409 = shalt.err (!%p2406_p10)
}
 0x1b1   : > { %2159 = dma.vmem_to_hbm [thread:$0]  (%p2832_p11), %s2775_s22, 32, %s2773_s8, %s1721_s9  }
 0x1b2 PF: > { %s1746_s11 = sand.u32 1, %s2444_s12   ;;  %p2833_p13 = scmp.ne.s32.totalorder %s2830_s27, 0 }
 0x1b3   : > { %p2834_p1 = scmp.ge.s32.totalorder %s2464_s17, 2  ;;  %s1747_s19 = scalar_lea.sflag [#allocation5], %s1746_s11 }
 0x1b5   : > { %p2166_p3 = pnand %p2834_p1, %p2833_p13 }
 0x1b7   : > { %2439 = dma.done.wait (!%p2166_p3), %s1747_s19, 32  }
 0x1b8   : > { %2441 = vsyncadd (!%p2166_p3), %s1747_s19, 4294967264  ;;  %s19_s17 = sadd.s32 1, %s2464_s17   ;;  %s2835_s12 = smov %s2448_s13 }
 0x1b9   : > { %p16_p4 = scmp.ge.s32.totalorder %s19_s17, 4   ;;  %s2836_s13 = smov %s2452_s14 }
 0x1ba   : > { %s2837_s14 = smov %s2549_s26  ;;  %s2838_s15 = smov %s2460_s16 }
 0x1bb   : > { %s2839_s16 = smov %s2841_s20  ;;  %18 = sbr.rel (!%p16_p4) target bundleno = 6 (0x6), region = 91 }
 0x1c2   :  { %1752 = vsyncpa [#allocation4], 1 }
 0x1c3   :  { %1754 = vsyncpa [#allocation4 + $0x1], 1 }
 0x1c4   :  { %1755 = vsyncpa [#allocation5], 1 }
 0x1c5   :  { %1757 = vsyncpa [#allocation5 + $0x1], 1 }

</bundles_post_ra>
